<compile_context>
chip_gen: v7x
topology: tpu7x:2x2x1
jax: 0.10.0
libtpu: 0.0.40
codegen_flags: <defaults>
</compile_context>

<pallas_src>
import functools
import math

import jax
import jax.numpy as jnp
from jax.experimental import pallas as pl
from jax.experimental.pallas import tpu as pltpu

# ArcFace constants (dead in the reference forward(); kept for parity).
MARGIN = 0.5
SCALE = 64
COS_M = math.cos(MARGIN)
SIN_M = math.sin(MARGIN)
TH = math.cos(math.pi - MARGIN)
MM = math.sin(math.pi - MARGIN) * MARGIN
# TODO(synk): margin/scale are unused by the reference forward(); not applied here.

_NEG_BIG = -1e30          # finite "-inf" stand-in (avoids inf-inf -> NaN)
_IGNORE_INDEX = -100      # F.cross_entropy default


def _round_up(x: int, m: int) -> int:
    return ((x + m - 1) // m) * m


def _ce_kernel(logits_ref, labels_ref, lsum_ref, cnt_ref,
               m_sc, l_sc, p_sc, *, num_rows, num_cols, ignore_index):
    """Online-logsumexp cross-entropy, accumulated across class tiles.

    logits_ref: (TB, TC) input dtype      (VMEM)
    labels_ref: (TB, 1)  int32            (VMEM, resident across class tiles)
    lsum_ref:   (1, 8, 128) f32           (VMEM) per-batch-tile loss sum
    cnt_ref:    (1, 8, 128) f32           (VMEM) per-batch-tile valid-row count
    m_sc/l_sc/p_sc: (TB, 1) f32 scratch   running max / exp-sum / picked logit
    """
    bi = pl.program_id(0)
    ci = pl.program_id(1)
    tb, tc = logits_ref.shape

    @pl.when(ci == 0)
    def _():
        m_sc[...] = jnp.full_like(m_sc, _NEG_BIG)
        l_sc[...] = jnp.zeros_like(l_sc)
        p_sc[...] = jnp.zeros_like(p_sc)

    labels = labels_ref[...]                                          # (TB, 1)
    col = jax.lax.broadcasted_iota(jnp.int32, (tb, tc), 1) + ci * tc
    valid_col = col < num_cols

    # Upcast in-register only; HBM traffic stays in the input dtype (bf16 ok).
    xf = jnp.where(valid_col, logits_ref[...].astype(jnp.float32), _NEG_BIG)

    # Online logsumexp update.
    m_prev = m_sc[...]
    m_new = jnp.maximum(m_prev, jnp.max(xf, axis=-1, keepdims=True))
    correction = jnp.exp(m_prev - m_new)
    l_sc[...] = l_sc[...] * correction + jnp.sum(jnp.exp(xf - m_new),
                                                 axis=-1, keepdims=True)
    m_sc[...] = m_new

    # Accumulate the logit at the label index (vectorized masked pick on the
    # already-loaded tile; the label falls inside exactly one class tile).
    p_sc[...] += jnp.sum(jnp.where(col == labels, xf, 0.0),
                         axis=-1, keepdims=True)

    @pl.when(ci == pl.num_programs(1) - 1)
    def _():
        row = jax.lax.broadcasted_iota(jnp.int32, (tb, 1), 0) + bi * tb
        valid_row = (row < num_rows) & (labels != ignore_index)
        lse = m_sc[...] + jnp.log(l_sc[...])
        per_loss = jnp.where(valid_row, lse - p_sc[...], 0.0)        # (TB, 1)
        loss_sum = jnp.sum(per_loss)
        n_valid = jnp.sum(valid_row.astype(jnp.float32))
        # Lane/sublane-dense stores (no masked vst).
        lsum_ref[...] = jnp.broadcast_to(loss_sum, lsum_ref.shape).astype(jnp.float32)
        cnt_ref[...] = jnp.broadcast_to(n_valid, cnt_ref.shape).astype(jnp.float32)


def arcface_loss(logits: jax.Array, labels: jax.Array,
                 *, block_b: int | None = None, block_c: int | None = None) -> jax.Array:
    """Pallas equivalent of ArcFaceLoss.forward(logits, labels).

    logits: (B, C) float array (f32 or bf16)
    labels: (B,) integer class indices (-100 entries are ignored)
    returns: scalar float32 mean cross-entropy over non-ignored rows.
    """
    B, C = logits.shape
    if block_b is None:
        block_b = min(256, _round_up(B, 8))
    if block_c is None:
        block_c = min(4096, _round_up(C, 128))
    block_b = _round_up(block_b, 8)
    block_c = _round_up(block_c, 128)

    nbt = pl.cdiv(B, block_b)
    nct = pl.cdiv(C, block_c)

    # Labels are tiny: pad with ignore_index so padded rows drop out of both
    # the sum and the divisor. Logits are NOT padded/copied; the kernel masks
    # the partial edge tiles using the static (B, C).
    b_pad = nbt * block_b
    labels_p = jnp.pad(labels.astype(jnp.int32), (0, b_pad - B),
                       constant_values=_IGNORE_INDEX).reshape(b_pad, 1)

    tile_bytes = block_b * block_c * logits.dtype.itemsize
    # Double-buffered logits + scratch + headroom; stays within v7x's 64 MiB.
    vmem_limit = int(min(48 * 1024 * 1024,
                         max(32 * 1024 * 1024, 4 * tile_bytes + (4 << 20))))

    kernel = functools.partial(_ce_kernel, num_rows=B, num_cols=C,
                               ignore_index=_IGNORE_INDEX)

    lsum, cnt = pl.pallas_call(
        kernel,
        out_shape=(jax.ShapeDtypeStruct((nbt, 8, 128), jnp.float32),
                   jax.ShapeDtypeStruct((nbt, 8, 128), jnp.float32)),
        grid_spec=pltpu.PrefetchScalarGridSpec(
            num_scalar_prefetch=0,
            grid=(nbt, nct),                       # class (reduction) axis last
            in_specs=[
                pl.BlockSpec((block_b, block_c), lambda i, j: (i, j)),
                pl.BlockSpec((block_b, 1), lambda i, j: (i, 0)),
            ],
            out_specs=[
                pl.BlockSpec((1, 8, 128), lambda i, j: (i, 0, 0)),
                pl.BlockSpec((1, 8, 128), lambda i, j: (i, 0, 0)),
            ],
            scratch_shapes=[pltpu.VMEM((block_b, 1), jnp.float32)] * 3,
        ),
        compiler_params=pltpu.CompilerParams(
            dimension_semantics=("parallel", "arbitrary"),
            vmem_limit_bytes=vmem_limit,
        ),
    )(logits, labels_p)

    total = jnp.sum(lsum[:, 0, 0])
    count = jnp.sum(cnt[:, 0, 0])
    return total / count


if __name__ == "__main__":
    key = jax.random.PRNGKey(0)
    k1, k2 = jax.random.split(key)

    # Small shapes that still exercise partial batch AND class edge tiles.
    B, C = 24, 384
    logits = jax.random.normal(k1, (B, C), dtype=jnp.float32)
    labels = jax.random.randint(k2, (B,), 0, C, dtype=jnp.int32)
    labels = labels.at[3].set(_IGNORE_INDEX)   # exercise ignore_index=-100

    loss = arcface_loss(logits, labels, block_b=16, block_c=256)
    jax.block_until_ready(loss)

    # Pure-JAX reference: mean CE over non-ignored rows.
    valid = labels != _IGNORE_INDEX
    safe_labels = jnp.where(valid, labels, 0)
    per = jax.nn.logsumexp(logits, axis=-1) - logits[jnp.arange(B), safe_labels]
    ref = jnp.sum(jnp.where(valid, per, 0.0)) / jnp.sum(valid.astype(jnp.float32))
    assert jnp.allclose(loss, ref, atol=1e-5, rtol=1e-5), (loss, ref)

    # bf16 logits path (halved HBM traffic; accumulation stays f32 in-kernel).
    logits_bf = logits.astype(jnp.bfloat16)
    labels_ok = jax.random.randint(k2, (B,), 0, C, dtype=jnp.int32)
    loss_bf = arcface_loss(logits_bf, labels_ok, block_b=16, block_c=256)
    jax.block_until_ready(loss_bf)
    lf = logits_bf.astype(jnp.float32)
    ref_bf = jnp.mean(jax.nn.logsumexp(lf, axis=-1) - lf[jnp.arange(B), labels_ok])
    assert jnp.allclose(loss_bf, ref_bf, atol=1e-3, rtol=1e-3), (loss_bf, ref_bf)

    print("KERNEL_OK")
</pallas_src>

<mosaic_0001>
module attributes {stable_mosaic.version = 11 : i64} {
  func.func @_ce_kernel(%arg0: i32, %arg1: i32, %arg2: memref<16x256xf32, #tpu.memory_space<vmem>>, %arg3: memref<16x1xi32, #tpu.memory_space<vmem>>, %arg4: memref<1x8x128xf32, #tpu.memory_space<vmem>>, %arg5: memref<1x8x128xf32, #tpu.memory_space<vmem>>, %arg6: memref<16x1xf32, #tpu.memory_space<vmem>>, %arg7: memref<16x1xf32, #tpu.memory_space<vmem>>, %arg8: memref<16x1xf32, #tpu.memory_space<vmem>>) attributes {dimension_semantics = [#tpu.dimension_semantics<parallel>, #tpu.dimension_semantics<arbitrary>], iteration_bounds = array<i64: 2, 2>, scalar_prefetch = 0 : i64, scratch_operands = 3 : i64, tpu.core_type = #tpu.core_type<tc>, window_params = [{transform_indices = @transform_0, window_bounds = array<i64: 16, 256>}, {transform_indices = @transform_1, window_bounds = array<i64: 16, 1>}, {transform_indices = @transform_2, window_bounds = array<i64: 1, 8, 128>}, {transform_indices = @transform_3, window_bounds = array<i64: 1, 8, 128>}]} {
    %c0_i32 = arith.constant 0 : i32
    %0 = arith.cmpi eq, %arg1, %c0_i32 : i32
    %1 = arith.extui %0 : i1 to i32
    %c0_i32_0 = arith.constant 0 : i32
    %2 = arith.cmpi ne, %1, %c0_i32_0 : i32
    scf.if %2 {
      %cst_21 = arith.constant -1.000000e+30 : f32
      %41 = vector.broadcast %cst_21 : f32 to vector<16x1xf32>
      %c0_22 = arith.constant 0 : index
      %c0_23 = arith.constant 0 : index
      %42 = vector.load %arg6[%c0_22, %c0_23] : memref<16x1xf32, #tpu.memory_space<vmem>>, vector<16x1xf32>
      tpu.vector_store %arg6[%c0_22, %c0_23], %41 {strides = array<i32>} : memref<16x1xf32, #tpu.memory_space<vmem>>, vector<16x1xf32>,
      %cst_24 = arith.constant 0.000000e+00 : f32
      %43 = vector.broadcast %cst_24 : f32 to vector<16x1xf32>
      %c0_25 = arith.constant 0 : index
      %c0_26 = arith.constant 0 : index
      %44 = vector.load %arg7[%c0_25, %c0_26] : memref<16x1xf32, #tpu.memory_space<vmem>>, vector<16x1xf32>
      tpu.vector_store %arg7[%c0_25, %c0_26], %43 {strides = array<i32>} : memref<16x1xf32, #tpu.memory_space<vmem>>, vector<16x1xf32>,
      %cst_27 = arith.constant 0.000000e+00 : f32
      %45 = vector.broadcast %cst_27 : f32 to vector<16x1xf32>
      %c0_28 = arith.constant 0 : index
      %c0_29 = arith.constant 0 : index
      %46 = vector.load %arg8[%c0_28, %c0_29] : memref<16x1xf32, #tpu.memory_space<vmem>>, vector<16x1xf32>
      tpu.vector_store %arg8[%c0_28, %c0_29], %45 {strides = array<i32>} : memref<16x1xf32, #tpu.memory_space<vmem>>, vector<16x1xf32>,
    } else {
    }
    %c0 = arith.constant 0 : index
    %c0_1 = arith.constant 0 : index
    %3 = vector.load %arg3[%c0, %c0_1] : memref<16x1xi32, #tpu.memory_space<vmem>>, vector<16x1xi32>
    %4 = tpu.iota {dimensions = array<i32: 1>} : vector<16x256xi32>
    %c256_i32 = arith.constant 256 : i32
    %5 = arith.muli %arg1, %c256_i32 : i32
    %6 = vector.broadcast %5 : i32 to vector<16x256xi32>
    %7 = arith.addi %4, %6 : vector<16x256xi32>
    %c384_i32 = arith.constant 384 : i32
    %8 = vector.broadcast %c384_i32 : i32 to vector<16x256xi32>
    %9 = arith.cmpi slt, %7, %8 : vector<16x256xi32>
    %c0_2 = arith.constant 0 : index
    %c0_3 = arith.constant 0 : index
    %10 = vector.load %arg2[%c0_2, %c0_3] : memref<16x256xf32, #tpu.memory_space<vmem>>, vector<16x256xf32>
    %cst = arith.constant -1.000000e+30 : f32
    %11 = vector.broadcast %cst : f32 to vector<16x256xf32>
    %12 = arith.select %9, %10, %11 : vector<16x256xi1>, vector<16x256xf32>
    %c0_4 = arith.constant 0 : index
    %c0_5 = arith.constant 0 : index
    %13 = vector.load %arg6[%c0_4, %c0_5] : memref<16x1xf32, #tpu.memory_space<vmem>>, vector<16x1xf32>
    %cst_6 = arith.constant dense<0xFF800000> : vector<16xf32>
    %14 = vector.multi_reduction <maximumf>, %12, %cst_6 [1] : vector<16x256xf32> to vector<16xf32>
    %15 = vector.shape_cast %14 : vector<16xf32> to vector<16x1xf32>
    %16 = arith.maximumf %13, %15 : vector<16x1xf32>
    %17 = arith.subf %13, %16 : vector<16x1xf32>
    %18 = math.exp %17 : vector<16x1xf32>
    %c0_7 = arith.constant 0 : index
    %c0_8 = arith.constant 0 : index
    %19 = vector.load %arg7[%c0_7, %c0_8] : memref<16x1xf32, #tpu.memory_space<vmem>>, vector<16x1xf32>
    %20 = arith.mulf %19, %18 : vector<16x1xf32>
    %21 = vector.broadcast %16 : vector<16x1xf32> to vector<16x256xf32>
    %22 = arith.subf %12, %21 : vector<16x256xf32>
    %23 = math.exp %22 : vector<16x256xf32>
    %cst_9 = arith.constant dense<0.000000e+00> : vector<16xf32>
    %24 = vector.multi_reduction <add>, %23, %cst_9 [1] : vector<16x256xf32> to vector<16xf32>
    %25 = vector.shape_cast %24 : vector<16xf32> to vector<16x1xf32>
    %26 = arith.addf %20, %25 : vector<16x1xf32>
    %c0_10 = arith.constant 0 : index
    %c0_11 = arith.constant 0 : index
    %27 = vector.load %arg7[%c0_10, %c0_11] : memref<16x1xf32, #tpu.memory_space<vmem>>, vector<16x1xf32>
    tpu.vector_store %arg7[%c0_10, %c0_11], %26 {strides = array<i32>} : memref<16x1xf32, #tpu.memory_space<vmem>>, vector<16x1xf32>,
    %c0_12 = arith.constant 0 : index
    %c0_13 = arith.constant 0 : index
    %28 = vector.load %arg6[%c0_12, %c0_13] : memref<16x1xf32, #tpu.memory_space<vmem>>, vector<16x1xf32>
    tpu.vector_store %arg6[%c0_12, %c0_13], %16 {strides = array<i32>} : memref<16x1xf32, #tpu.memory_space<vmem>>, vector<16x1xf32>,
    %c0_14 = arith.constant 0 : index
    %c0_15 = arith.constant 0 : index
    %29 = vector.load %arg8[%c0_14, %c0_15] : memref<16x1xf32, #tpu.memory_space<vmem>>, vector<16x1xf32>
    %30 = vector.broadcast %3 : vector<16x1xi32> to vector<16x256xi32>
    %31 = arith.cmpi eq, %7, %30 : vector<16x256xi32>
    %cst_16 = arith.constant 0.000000e+00 : f32
    %32 = vector.broadcast %cst_16 : f32 to vector<16x256xf32>
    %33 = arith.select %31, %12, %32 : vector<16x256xi1>, vector<16x256xf32>
    %cst_17 = arith.constant dense<0.000000e+00> : vector<16xf32>
    %34 = vector.multi_reduction <add>, %33, %cst_17 [1] : vector<16x256xf32> to vector<16xf32>
    %35 = vector.shape_cast %34 : vector<16xf32> to vector<16x1xf32>
    %36 = arith.addf %29, %35 : vector<16x1xf32>
    %c0_18 = arith.constant 0 : index
    %c0_19 = arith.constant 0 : index
    %37 = vector.load %arg8[%c0_18, %c0_19] : memref<16x1xf32, #tpu.memory_space<vmem>>, vector<16x1xf32>
    tpu.vector_store %arg8[%c0_18, %c0_19], %36 {strides = array<i32>} : memref<16x1xf32, #tpu.memory_space<vmem>>, vector<16x1xf32>,
    %c1_i32 = arith.constant 1 : i32
    %38 = arith.cmpi eq, %arg1, %c1_i32 : i32
    %39 = arith.extui %38 : i1 to i32
    %c0_i32_20 = arith.constant 0 : i32
    %40 = arith.cmpi ne, %39, %c0_i32_20 : i32
    scf.if %40 {
      %41 = tpu.iota {dimensions = array<i32: 0>} : vector<16x1xi32>
      %c16_i32 = arith.constant 16 : i32
      %42 = arith.muli %arg0, %c16_i32 : i32
      %43 = vector.broadcast %42 : i32 to vector<16x1xi32>
      %44 = arith.addi %41, %43 : vector<16x1xi32>
      %c24_i32 = arith.constant 24 : i32
      %45 = vector.broadcast %c24_i32 : i32 to vector<16x1xi32>
      %46 = arith.cmpi slt, %44, %45 : vector<16x1xi32>
      %c-100_i32 = arith.constant -100 : i32
      %47 = vector.broadcast %c-100_i32 : i32 to vector<16x1xi32>
      %48 = arith.cmpi ne, %3, %47 : vector<16x1xi32>
      %49 = arith.andi %46, %48 : vector<16x1xi1>
      %c0_21 = arith.constant 0 : index
      %c0_22 = arith.constant 0 : index
      %50 = vector.load %arg6[%c0_21, %c0_22] : memref<16x1xf32, #tpu.memory_space<vmem>>, vector<16x1xf32>
      %c0_23 = arith.constant 0 : index
      %c0_24 = arith.constant 0 : index
      %51 = vector.load %arg7[%c0_23, %c0_24] : memref<16x1xf32, #tpu.memory_space<vmem>>, vector<16x1xf32>
      %52 = math.log %51 : vector<16x1xf32>
      %53 = arith.addf %50, %52 : vector<16x1xf32>
      %c0_25 = arith.constant 0 : index
      %c0_26 = arith.constant 0 : index
      %54 = vector.load %arg8[%c0_25, %c0_26] : memref<16x1xf32, #tpu.memory_space<vmem>>, vector<16x1xf32>
      %55 = arith.subf %53, %54 : vector<16x1xf32>
      %cst_27 = arith.constant 0.000000e+00 : f32
      %56 = vector.broadcast %cst_27 : f32 to vector<16x1xf32>
      %57 = arith.select %49, %55, %56 : vector<16x1xi1>, vector<16x1xf32>
      %58 = vector.shape_cast %57 : vector<16x1xf32> to vector<1x16x1xf32>
      %cst_28 = arith.constant dense<0.000000e+00> : vector<1xf32>
      %59 = vector.multi_reduction <add>, %58, %cst_28 [1, 2] : vector<1x16x1xf32> to vector<1xf32>
      %60 = vector.shape_cast %59 : vector<1xf32> to vector<1x1x1xf32>
      %61 = vector.extract %60[0, 0, 0] : f32 from vector<1x1x1xf32>
      %62 = arith.extui %49 : vector<16x1xi1> to vector<16x1xi32>
      %63 = arith.sitofp %62 : vector<16x1xi32> to vector<16x1xf32>
      %64 = vector.shape_cast %63 : vector<16x1xf32> to vector<1x16x1xf32>
      %cst_29 = arith.constant dense<0.000000e+00> : vector<1xf32>
      %65 = vector.multi_reduction <add>, %64, %cst_29 [1, 2] : vector<1x16x1xf32> to vector<1xf32>
      %66 = vector.shape_cast %65 : vector<1xf32> to vector<1x1x1xf32>
      %67 = vector.extract %66[0, 0, 0] : f32 from vector<1x1x1xf32>
      %68 = vector.broadcast %61 : f32 to vector<1x8x128xf32>
      %c0_30 = arith.constant 0 : index
      %c0_31 = arith.constant 0 : index
      %c0_32 = arith.constant 0 : index
      %69 = vector.load %arg4[%c0_30, %c0_31, %c0_32] : memref<1x8x128xf32, #tpu.memory_space<vmem>>, vector<1x8x128xf32>
      tpu.vector_store %arg4[%c0_30, %c0_31, %c0_32], %68 {strides = array<i32>} : memref<1x8x128xf32, #tpu.memory_space<vmem>>, vector<1x8x128xf32>,
      %70 = vector.broadcast %67 : f32 to vector<1x8x128xf32>
      %c0_33 = arith.constant 0 : index
      %c0_34 = arith.constant 0 : index
      %c0_35 = arith.constant 0 : index
      %71 = vector.load %arg5[%c0_33, %c0_34, %c0_35] : memref<1x8x128xf32, #tpu.memory_space<vmem>>, vector<1x8x128xf32>
      tpu.vector_store %arg5[%c0_33, %c0_34, %c0_35], %70 {strides = array<i32>} : memref<1x8x128xf32, #tpu.memory_space<vmem>>, vector<1x8x128xf32>,
    } else {
    }
    return
  }
  func.func @transform_0(%arg0: i32, %arg1: i32) -> (i32, i32) {
    %c0_i32 = arith.constant 0 : i32
    return %arg0, %arg1 : i32, i32
  }
  func.func @transform_1(%arg0: i32, %arg1: i32) -> (i32, i32) {
    %c0_i32 = arith.constant 0 : i32
    %c0_i32_0 = arith.constant 0 : i32
    return %arg0, %c0_i32 : i32, i32
  }
  func.func @transform_2(%arg0: i32, %arg1: i32) -> (i32, i32, i32) {
    %c0_i32 = arith.constant 0 : i32
    %c0_i32_0 = arith.constant 0 : i32
    %c0_i32_1 = arith.constant 0 : i32
    return %arg0, %c0_i32, %c0_i32_0 : i32, i32, i32
  }
  func.func @transform_3(%arg0: i32, %arg1: i32) -> (i32, i32, i32) {
    %c0_i32 = arith.constant 0 : i32
    %c0_i32_0 = arith.constant 0 : i32
    %c0_i32_1 = arith.constant 0 : i32
    return %arg0, %c0_i32, %c0_i32_0 : i32, i32, i32
  }
}

</mosaic_0001>

<bundles_post_ra>
// kernel: tpu_custom_call.1
= control target key start
LH: loop header
LB: loop body
LE: loop exit
PB: predicated region body
PF: predicated region fallthrough
CT: control target
= control target key end

     0   :  { %9 = vsyncpa [#allocation6], 0  ;;  %s1278_s0 = inlined_call_operand.hbm [shape: f32[24,384], index: 0, kind: input, shape index: {}]   ;;  %s1279_s1 = inlined_call_operand.vmem [shape: s32[32,1], index: 1, kind: input, shape index: {}]   ;;  %s1280_s2 = inlined_call_operand.hbm [shape: f32[2,8,128], index: 2, kind: output, shape index: {0}]   ;;  %s1281_s3 = inlined_call_operand.hbm [shape: f32[2,8,128], index: 3, kind: output, shape index: {1}]  }
   0x1   :  { %11 = vsyncpa [#allocation6 + $0x1], 0 }
   0x2   :  { %12 = vsyncpa [#allocation7], 0 }
   0x3   :  { %14 = vsyncpa [#allocation7 + $0x1], 0 }
   0x4   :  { %15 = vsyncpa [#allocation10], 0 }
   0x5   :  { %17 = vsyncpa [#allocation10 + $0x1], 0  ;;  %s969_s12 = smov 0   ;;  %s971_s13 = smov 0  }
   0x6   :  { %s973_s14 = smov 0   ;;  %s975_s15 = smov 0  }
   0x7   :  { %s977_s16 = smov 0   ;;  %s979_s17 = smov 0  }
   0x8   :  { %s981_s18 = smov 0   ;;  %s983_s19 = smov 0  }
   0x9   :  { %s985_s20 = smov 0   ;;  %s987_s21 = smov 0  }
   0xa   :  { %s989_s22 = smov 0  }
   0xb LB: > { %1287 = sst [smem:[#allocation14_spill]] %s918_s17  ;;  %s596_s23 = sadd.s32 4294967295, %s938_s22   ;;  %s938_s22 = sphi %s989_s22, %s23_s22   ;;  %s934_s21 = sphi %s987_s21, %s1305_s21   ;;  %s930_s20 = sphi %s985_s20, %s1304_s20   ;;  %s926_s19 = sphi %s983_s19, %s1303_s19   ;;  %s922_s18 = sphi %s981_s18, %s1302_s18   ;;  %s918_s17 = sphi %s979_s17, %s1301_s17   ;;  %s914_s16 = sphi %s977_s16, %s1310_s16   ;;  %s910_s15 = sphi %s975_s15, %s1309_s15   ;;  %s906_s14 = sphi %s973_s14, %s1308_s14   ;;  %s902_s13 = sphi %s971_s13, %s1307_s13   ;;  %s898_s12 = sphi %s969_s12, %s1306_s12  }
   0xc   : > { %1288 = sst [smem:[#allocation15_spill]] %s930_s20  ;;  %s597_s24 = sadd.s32 4294967294, %s938_s22  }
   0xd   : > { %1289 = sst [smem:[#allocation16_spill]] %s934_s21  ;;  %s32_s25 = sadd.s32 1, %s930_s20 }
   0xe   : > { %s35_s26 = sadd.s32 1, %s934_s21  ;;  %p33_p0 = scmp.ge.s32.totalorder %s32_s25, 2 }
   0xf   : > { %s44_s27 = sadd.s32 1, %s918_s17  ;;  %p51_p1 = scmp.ne.s32.totalorder %s918_s17, %s914_s16 }
  0x10   : > { %p52_p2 = scmp.eq.s32.totalorder %s938_s22, 0  ;;  %s1312_s25 = smov (%p33_p0, %s32_s25), 0 }
  0x11   : > { %1290 = sst [smem:[#allocation17_spill]] %s1312_s25  ;;  %s1314_s26 = smov (!%p33_p0, %s35_s26), %s934_s21 }
  0x12   : > { %s40_s28 = ssub.s32 %s930_s20, %s1312_s25  ;;  %p1035_p3 = por %p52_p2, %p51_p1 }
  0x13   : > { %p37_p4 = scmp.ge.s32.totalorder %s1314_s26, 2  ;;  %p57_p5 = scmp.ne.s32.totalorder %s914_s16, %s910_s15 }
  0x14   : > { %p58_p6 = scmp.eq.s32.totalorder %s596_s23, 0  ;;  %s96_s30 = sadd.s32 1, %s906_s14 }
  0x15   : > { %s1316_s26 = smov (%p37_p4, %s1314_s26), 0  ;;  %p106_p8 = scmp.ne.s32.totalorder %s906_s14, %s902_s13 }
  0x16   : > { %1292 = sst [smem:[#allocation18_spill]] %s1316_s26  ;;  %p1043_p7 = por %p58_p6, %p57_p5 }
  0x17   : > { %s39_s5 = ssub.s32 %s934_s21, %s1316_s26  ;;  %p107_p9 = scmp.eq.s32.totalorder %s596_s23, 3 }
  0x18   : > { %s41_s6 = sor.u32 %s40_s28, %s39_s5  ;;  %p94_p10 = scmp.eq.s32.totalorder %s39_s5, 0 }
  0x19   : > { %p42_p11 = scmp.eq.s32.totalorder %s41_s6, 0  ;;  %p1051_p12 = por %p107_p9, %p106_p8 }
  0x1a   : > { %s1056_s8 = scalar_select %p94_p10, %s906_s14, %s96_s30  }
  0x1b   : > { %s1059_s9 = scalar_select %p42_p11, %s918_s17, %s44_s27  }
  0x1c   : > { %1295 = sst [smem:[#allocation19_spill]] %s1056_s8  ;;  %p112_p13 = scmp.ne.s32.totalorder %s902_s13, %s898_s12 }
  0x1d   : > { %1296 = sst [smem:[#allocation20_spill]] %s1059_s9  ;;  %p113_p0 = scmp.eq.s32.totalorder %s597_s24, 3 }
  0x1e   : > { %p599_p2 = scmp.ge.s32.totalorder %s938_s22, 4 }
  0x1f   : > { %p1063_p1 = por %p113_p0, %p112_p13 }
  0x20   : > { %155 = sbr.rel (%p599_p2) target bundleno = 78 (0x4e), region = 16 }
  0x21   : > { %s1297_s10 = scalar_select %p1063_p1, 1, 0 }
  0x27   : > { %158 = sbr.rel (!%p1035_p3) target bundleno = 78 (0x4e), region = 20  ;;  %s159_s11 = sand.u32 (%p1035_p3), 1, %s918_s17  }
  0x28   : > { %s601_s15 = sshll.u32 (%p1035_p3), %s934_s21, 1  ;;  %s600_s23 = sshll.u32 (%p1035_p3), %s159_s11, 5 }
  0x29   : > { %s602_s27 = sshll.u32 (%p1035_p3), %s930_s20, 1  ;;  %s166_s28 = ssub.s32 (%p1035_p3), 3, %s601_s15 }
  0x2a   : > { %s170_s30 = ssub.s32 (%p1035_p3), 3, %s602_s27  ;;  %p167_p4 = scmp.lt.s32.totalorder (%p1035_p3), %s166_s28, 2 }
  0x2b   : > { %p171_p5 = scmp.lt.s32.totalorder (%p1035_p3), %s170_s30, 2  ;;  %s1079_s6 = scalar_lea.sflag (%p1035_p3), [#allocation6], %s159_s11 }
  0x2c   : > { %s163_s26 = scalar_lea.vmem (%p1035_p3), [#allocation5], %s600_s23 }
  0x2e   : > { %s1318_s28 = smov (!%p167_p4, %s166_s28), 2  ;;  %s1320_s30 = smov (!%p171_p5, %s170_s30), 2 }
  0x2f   : > { %s603_s24 = sshll.u32 %s1318_s28, 7 }
  0x30   : > { %s1076_s5 = smul.u32 %s603_s24, %s1320_s30 }
  0x32   : > { %s175_s29 = ssub.s32 512, %s1076_s5 }
  0x33   : > { %176 = vsyncadd %s1079_s6, %s175_s29  ;;  %p604_p3 = scmp.ne.s32.totalorder %s1076_s5, 0  ;;  %s626_s15 = smul.u32 6, %s934_s21 }
  0x34   : > { %s607_s25 = sshll.u32 %s1320_s30, 3  ;;  %s184_s20 = sshll.u32 %s163_s26, 4  ;;  %s1087_s20 = int_to_ptr.vmem [resolvable:$true] %s184_s20 }
  0x35   : > { %s179_s9 = sadd.s32 %s626_s15, %s602_s27  ;;  %s183_s24 = smul.u32 %s607_s25, %s1318_s28 }
  0x36   : > { %s606_s17 = sshll.u32 %s179_s9, 7  ;;  %s760_s27 = scalar_lea.hbm %s1278_s0, 1152 }
  0x37   : > { %s1092_s23 = scalar_lea.hbm %s1278_s0, %s606_s17  ;;  %s1094_s29 = sshll.u32 %s183_s24, 4 }
  0x38   : > { %s756_s21 = scalar_lea.hbm %s1092_s23, %s1094_s29  ;;  %p761_p10 = scmp.lt.u32.totalorder %s1092_s23, %s1278_s0 }
  0x39   : > { %p757_p6 = scmp.ne.s32.totalorder %s1092_s23, %s756_s21  ;;  %p762_p11 = scmp.lt.u32.totalorder %s760_s27, %s756_s21 }
  0x3a   : > { %p764_p0 = scmp.lt.u32.totalorder %s756_s21, %s1092_s23 }
  0x3b   : > { %p758_p8 = pnand %p757_p6, %p604_p3  ;;  %p763_p13 = por %p762_p11, %p761_p10 }
  0x3d   : > { %p759_p9 = pneg %p758_p8  ;;  %p765_p2 = por %p764_p0, %p763_p13 }
  0x3f   : > { %p766_p4 = pnand %p765_p2, %p759_p9 }
  0x41   : > { %769 = shalt.err (!%p766_p4)
}
  0x42   : > { %s770_s17 = scalar_lea.vmem %s1087_s20, %s1094_s29  ;;  %s940_s15 = smov [#allocation5]  }
  0x43   : > { %p771_p5 = scmp.ne.s32.totalorder %s1087_s20, %s770_s17  ;;  %s774_s24 = sshll.u32 %s940_s15, 4  ;;  %s775_s24 = int_to_ptr.vmem [resolvable:$false] %s774_s24 }
  0x44   : > { %s776_s11 = scalar_lea.vmem %s775_s24, 1024  ;;  %p777_p1 = scmp.lt.s32.totalorder %s1087_s20, %s775_s24 }
  0x45   : > { %p772_p6 = pnand %p771_p5, %p604_p3  ;;  %p778_p10 = scmp.lt.s32.totalorder %s776_s11, %s770_s17 }
  0x47   : > { %p773_p8 = pneg %p772_p6  ;;  %p779_p11 = por %p778_p10, %p777_p1 }
  0x49   : > { %p780_p13 = pnand %p779_p11, %p773_p8 }
  0x4b   : > { %783 = shalt.err (!%p780_p13)
}
  0x4c   : > { %s941_s21 = smov 384   ;;  %s942_s26 = smov 256  }
  0x4d   : > { %190 = dma.hbm_to_vmem [thread:$0]  (%p604_p3), %s1092_s23, %s1094_s29, %s1087_s20, %s1079_s6, %s941_s21, %s942_s26, %s607_s25  }
  0x4e PF: > { %p608_p9 = scmp.ge.s32.totalorder %s938_s22, 1  ;;  %p201_p0 = scmp.lt.s32.totalorder %s938_s22, 5 }
  0x50   : > { %p202_p1 = pnand %p608_p9, %p201_p0 }
  0x51   : > { %s207_s9 = sand.u32 (!%p202_p1), 1, %s914_s16  }
  0x52   : > { %205 = sbr.rel (%p202_p1) target bundleno = 839 (0x347), region = 28  ;;  %s609_s27 = sshll.u32 (!%p202_p1), %s207_s9, 5 }
  0x53   : > { %s208_s28 = scalar_lea.sflag (!%p202_p1), [#allocation6], %s207_s9  ;;  %s1126_s8 = scalar_lea.vmem (!%p202_p1), [#allocation5], %s609_s27 }
  0x59   : > { %885 = dma.done.wait (%p1043_p7), %s208_s28, 512  }
  0x5a   : > { %887 = vsyncadd (%p1043_p7), %s208_s28, 4294966784  ;;  %s1133_s20 = sand.u32 1, %s902_s13   ;;  %s612_s25 = sshll.u32 %s926_s19, 1 }
  0x5b   : > { %s610_s30 = sshll.u32 %s1133_s20, 3  ;;  %p255_p3 = scmp.lt.s32.totalorder %s612_s25, 3 }
  0x5c   : > { %s1142_s17 = scalar_lea.vmem [#allocation8], %s610_s30  ;;  %s1144_s15 = scalar_lea.vmem [#allocation9], %s610_s30 }
  0x5d   : > { %s1322_s25 = smov (!%p255_p3, %s612_s25), 3  ;;  %p614_p7 = scmp.ne.s32.totalorder %s922_s18, 0 }
  0x5e   : > { %s613_s5 = sshll.u32 %s1322_s25, 3  ;;  %vm264_vm0 = vcmask (!%p614_p7), 7168   ;;  %v943_v0 = vmov (!%p614_p7), -1e+30   ;;  %v944_v1 = vmov (!%p614_p7), 0.0  }
  0x5f   : > { %s1140_s29 = scalar_lea.vmem %s1279_s1, %s613_s5  ;;  %263 = sbr.rel (%p614_p7) target bundleno = 102 (0x66), region = 36  ;;  %265 = vst.msk [vmem:[#allocation2] sm:$0xff] (!%p614_p7), %vm264_vm0, %v943_v0  ;;  %266 = vst.msk [vmem:[#allocation2 + $0x8] sm:$0xff] (!%p614_p7), %vm264_vm0, %v943_v0 }
  0x60   : > { %267 = vst.msk [vmem:[#allocation3] sm:$0xff] (!%p614_p7), %vm264_vm0, %v944_v1  ;;  %268 = vst.msk [vmem:[#allocation3 + $0x8] sm:$0xff] (!%p614_p7), %vm264_vm0, %v944_v1 }
  0x61   : > { %269 = vst.msk [vmem:[#allocation4] sm:$0xff] (!%p614_p7), %vm264_vm0, %v944_v1  ;;  %270 = vst.msk [vmem:[#allocation4 + $0x8] sm:$0xff] (!%p614_p7), %vm264_vm0, %v944_v1 }
  0x66 PF: > { %v273_v2 = vlaneseq  ;;  %s615_s4 = sshll.u32 %s922_s18, 8  ;;  %v282_v7 = vld [vmem:[%s1126_s8] sm:$0xff]  ;;  %v283_v9 = vld [vmem:[%s1126_s8 + $0x8] sm:$0xff]  ;;  %v284_v10 = vld [vmem:[%s1126_s8 + $0x10] sm:$0xff]  ;;  %v945_v18 = vmov 0   ;;  %vm340_vm3 = vcmask 7168  }
  0x67   : > { %v277_v3 = vstv %s615_s4  ;;  %v285_v11 = vld [vmem:[%s1126_s8 + $0x18] sm:$0xff]  ;;  %738 = vset.pattern.permute.xlu1 %v945_v18  ;;  %739 = vset.pattern.permute.xlu0 %v945_v18  ;;  %v1160_v19 = vld [vmem:[%s1140_s29] sm:$0xff]  ;;  %v306_v59 = vld [vmem:[#allocation3] sm:$0xff]  ;;  %p616_p2 = scmp.ne.s32.totalorder %s922_s18, 1 }
  0x68   : > { %v274_v4 = vand.u32 127, %v273_v2  ;;  %v290_v20 = vld [vmem:[#allocation2] sm:$0xff]  ;;  %v291_v23 = vld [vmem:[#allocation2 + $0x8] sm:$0xff]  ;;  %v307_v63 = vld [vmem:[#allocation3 + $0x8] sm:$0xff]  ;;  %s617_s24 = sshll.u32 (!%p616_p2), %s926_s19, 4  ;;  %vm384_vm9 = vcmp.ne.s32.totalorder (!%p616_p2), %v1160_v19, 4294967196 }
  0x69   : > { %v1166_v28 = vld [vmem:[%s1140_s29 + $0x8] sm:$0xff]  ;;  %v345_v53 = vld [vmem:[#allocation4] sm:$0xff] }
  0x6a   : > { %v275_v5 = vadd.s32 128, %v274_v4  ;;  %v1149_v6 = vadd.s32 %v277_v3, %v274_v4  ;;  %vm385_vm11 = vcmp.ne.s32.totalorder (!%p616_p2), %v1166_v28, 4294967196 }
  0x6c   : > { %v1152_v8 = vadd.s32 %v277_v3, %v275_v5  ;;  %vm280_vm1 = vcmp.lt.s32.totalorder %v1149_v6, 384  ;;  %v346_v5 = vld [vmem:[#allocation4 + $0x8] sm:$0xff] }
  0x6d   : > { %v286_v12 = vsel %vm280_vm1, %v282_v7, -1e+30  ;;  %v288_v14 = vsel %vm280_vm1, %v284_v10, -1e+30  ;;  %v376_v10 = vshrl.u32 (!%p616_p2), %v273_v2, 7 }
  0x6e   : > { %vm281_vm2 = vcmp.lt.s32.totalorder %v1152_v8, 384 }
  0x6f   : > { %v287_v13 = vsel %vm281_vm2, %v283_v9, -1e+30  ;;  %v289_v15 = vsel %vm281_vm2, %v285_v11, -1e+30  ;;  %v377_v11 = vadd.s32 (!%p616_p2), 8, %v376_v10 }
  0x70   : > { %v292_v16 = vmax.f32 %v286_v12, %v287_v13  ;;  %v295_v17 = vmax.f32 %v288_v14, %v289_v15 }
  0x72   : > { %293 = vmax.xlane.f32.xlu0 %v292_v16 }
  0x76   : > { %296 = vmax.xlane.f32.xlu0 %v295_v17 }
  0x8c   : > { %348 = vperm.xlu0 %739, %v1160_v19  }
  0xff   : > { %v294_v21 = vpop.xlane.xlu0 %293 }
 0x100   : > { %v298_v22 = vmax.f32 %v290_v20, %v294_v21 }
 0x102   : > { %v300_v24 = vsub.f32 %v290_v20, %v298_v22  ;;  %343 = vst.msk [vmem:[#allocation2] sm:$0xff] %vm340_vm3, %v298_v22  ;;  %312 = vperm.xlu1 %738, %v298_v22  }
 0x103   : > { %v297_v25 = vpop.xlane.xlu0 %296 }
 0x104   : > { %v299_v26 = vmax.f32 %v291_v23, %v297_v25  ;;  %v302_v56 = vmul.f32 1.442695, %v300_v24 }
 0x106   : > { %v301_v27 = vsub.f32 %v291_v23, %v299_v26  ;;  %344 = vst.msk [vmem:[#allocation2 + $0x8] sm:$0xff] %vm340_vm3, %v299_v26  ;;  %317 = vperm.xlu1 %738, %v299_v26  }
 0x108   : > { %v304_v57 = vmul.f32 1.442695, %v301_v27  ;;  %v946_v27 = vmov (!%p616_p2), 0.0  }
 0x109   : > { %v388_v16 = vld [vmem:[#allocation2] sm:$0xff] (!%p616_p2) }
 0x10a   : > { %351 = vperm.xlu1 %738, %v1166_v28  }
 0x10b   : > { %v349_v29 = vpop.permute.xlu0 %348 }
 0x10c   : > { %vm353_vm4 = vcmp.eq.s32.totalorder %v1149_v6, %v349_v29  ;;  %vm354_vm5 = vcmp.eq.s32.totalorder %v1152_v8, %v349_v29 }
 0x10d   : > { %v357_v30 = vsel %vm353_vm4, %v286_v12, 0.0  ;;  %v358_v31 = vsel %vm354_vm5, %v287_v13, 0.0  ;;  %v389_v18 = vld [vmem:[#allocation2 + $0x8] sm:$0xff] (!%p616_p2) }
 0x10e   : > { %v361_v32 = vadd.f32 %v358_v31, %v357_v30 }
 0x110   : > { %362 = vadd.xlane.f32.xlu0 %v361_v32 }
 0x181   : > { %v313_v33 = vpop.permute.xlu1 %312 }
 0x182   : > { %v320_v34 = vsub.f32 %v286_v12, %v313_v33  ;;  %v321_v35 = vsub.f32 %v287_v13, %v313_v33  ;;  %v379_v12 = vstv (!%p616_p2), %s617_s24 }
 0x183   : > { %v380_v13 = vadd.s32 (!%p616_p2), %v379_v12, %v376_v10 }
 0x184   : > { %v324_v36 = vmul.f32 1.442695, %v320_v34  ;;  %v326_v37 = vmul.f32 1.442695, %v321_v35 }
 0x185   : > { %v318_v38 = vpop.permute.xlu1 %317  ;;  %vm382_vm8 = vcmp.lt.s32.totalorder (!%p616_p2), %v380_v13, 24 }
 0x186   : > { %740 = vpow2.f32 %v324_v36  ;;  %v322_v39 = vsub.f32 %v288_v14, %v318_v38  ;;  %v323_v40 = vsub.f32 %v289_v15, %v318_v38  ;;  %vm386_vm12 = vmand (!%p616_p2), %vm382_vm8, %vm384_vm9 }
 0x187   : > { %742 = vpow2.f32 %v326_v37  ;;  %v618_v29 = vsel (!%p616_p2), %vm386_vm12, 1.0, %v946_v27 }
 0x188   : > { %v328_v41 = vmul.f32 1.442695, %v322_v39  ;;  %v330_v42 = vmul.f32 1.442695, %v323_v40  ;;  %v420_v28 = vsel (!%p616_p2), %vm340_vm3, %v618_v29, 0.0 }
 0x189   : > { %v352_v45 = vpop.permute.xlu1 %351 }
 0x18a   : > { %744 = vpow2.f32 %v328_v41  ;;  %vm355_vm6 = vcmp.eq.s32.totalorder %v1149_v6, %v352_v45  ;;  %vm356_vm7 = vcmp.eq.s32.totalorder %v1152_v8, %v352_v45 }
 0x18b   : > { %746 = vpow2.f32 %v330_v42  ;;  %v359_v50 = vsel %vm355_vm6, %v288_v14, 0.0  ;;  %v360_v51 = vsel %vm356_vm7, %v289_v15, 0.0  ;;  %v381_v14 = vadd.s32 (!%p616_p2), %v379_v12, %v377_v11 }
 0x18c   : > { %v364_v52 = vadd.f32 %v360_v51, %v359_v50  ;;  %748 = vpow2.f32 %v302_v56 }
 0x18d   : > { %750 = vpow2.f32 %v304_v57  ;;  %vm383_vm10 = vcmp.lt.s32.totalorder (!%p616_p2), %v381_v14, 24 }
 0x18e   : > { %vm387_vm13 = vmand (!%p616_p2), %vm383_vm10, %vm385_vm11 }
 0x18f   : > { %v619_v30 = vsel (!%p616_p2), %vm387_vm13, 1.0, %v946_v27 }
 0x190   : > { %v741_v43 = vpop.eup %740  ;;  %v421_v34 = vsel (!%p616_p2), %vm340_vm3, %v619_v30, 0.0 }
 0x191   : > { %v743_v44 = vpop.eup %742  ;;  %v422_v36 = vadd.f32 (!%p616_p2), %v421_v34, %v420_v28 }
 0x192   : > { %v332_v46 = vadd.f32 %v743_v44, %v741_v43 }
 0x194   : > { %v745_v47 = vpop.eup %744  ;;  %333 = vadd.xlane.f32.xlu1 %v332_v46 }
 0x195   : > { %v747_v48 = vpop.eup %746 }
 0x196   : > { %v335_v49 = vadd.f32 %v747_v48, %v745_v47  ;;  %v749_v58 = vpop.eup %748 }
 0x197   : > { %v308_v60 = vmul.f32 %v749_v58, %v306_v59  ;;  %v751_v61 = vpop.eup %750 }
 0x198   : > { %336 = vadd.xlane.f32.xlu1 %v335_v49  ;;  %v309_v1 = vmul.f32 %v751_v61, %v307_v63 }
 0x19c   : > { %365 = vadd.xlane.f32.xlu1 %v364_v52 }
 0x19d   : > { %v363_v54 = vpop.xlane.xlu0 %362 }
 0x19e   : > { %v367_v55 = vadd.f32 %v363_v54, %v345_v53 }
 0x1a0   : > { %369 = vst.msk [vmem:[#allocation4] sm:$0xff] %vm340_vm3, %v367_v55 }
 0x1a7   : > { %v398_v2 = vld [vmem:[#allocation4] sm:$0xff] (!%p616_p2) }
 0x221   : > { %v334_v62 = vpop.xlane.xlu1 %333 }
 0x222   : > { %v338_v0 = vadd.f32 %v334_v62, %v308_v60 }
 0x224   : > { %341 = vst.msk [vmem:[#allocation3] sm:$0xff] %vm340_vm3, %v338_v0 }
 0x225   : > { %v337_v3 = vpop.xlane.xlu1 %336 }
 0x226   : > { %v339_v4 = vadd.f32 %v337_v3, %v309_v1  ;;  %374 = sbr.rel (%p616_p2) target bundleno = 791 (0x317), region = 40 }
 0x228   : > { %342 = vst.msk [vmem:[#allocation3 + $0x8] sm:$0xff] %vm340_vm3, %v339_v4 }
 0x229   : > { %v366_v6 = vpop.xlane.xlu1 %365 }
 0x22a   : > { %v368_v7 = vadd.f32 %v366_v6, %v346_v5 }
 0x22b   : > { %v390_v8 = vld [vmem:[#allocation3] sm:$0xff] (!%p616_p2) }
 0x22c   : > { %370 = vst.msk [vmem:[#allocation4 + $0x8] sm:$0xff] %vm340_vm3, %v368_v7  ;;  %752 = vlog2.f32 (!%p616_p2), %v390_v8 }
 0x22f   : > { %v391_v9 = vld [vmem:[#allocation3 + $0x8] sm:$0xff] }
 0x230   : > { %754 = vlog2.f32 %v391_v9 }
 0x233   : > { %v399_v23 = vld [vmem:[#allocation4 + $0x8] sm:$0xff] }
 0x236   : > { %v753_v15 = vpop.eup %752 }
 0x237   : > { %v393_v20 = vmul.f32 0.6931472, %v753_v15 }
 0x239   : > { %v396_v22 = vadd.f32 %v393_v20, %v388_v16 }
 0x23a   : > { %v755_v17 = vpop.eup %754 }
 0x23b   : > { %v395_v21 = vmul.f32 0.6931472, %v755_v17  ;;  %v400_v25 = vsub.f32 %v396_v22, %v398_v2 }
 0x23d   : > { %v397_v24 = vadd.f32 %v395_v21, %v389_v18  ;;  %v402_v31 = vsel %vm386_vm12, %v400_v25, 0.0 }
 0x23e   : > { %v404_v19 = vsel %vm340_vm3, %v402_v31, 0.0 }
 0x23f   : > { %v401_v26 = vsub.f32 %v397_v24, %v399_v23 }
 0x241   : > { %v403_v32 = vsel %vm387_vm13, %v401_v26, 0.0 }
 0x242   : > { %v405_v33 = vsel %vm340_vm3, %v403_v32, 0.0 }
 0x243   : > { %v406_v35 = vadd.f32 %v405_v33, %v404_v19 }
 0x245   : > { %407 = vadd.xlane.f32.xlu0 %v406_v35 }
 0x249   : > { %423 = vadd.xlane.f32.xlu0 %v422_v36 }
 0x2d2   : > { %v408_v37 = vpop.xlane.xlu0 %407 }
 0x2d3   : > { %v409_v38 = vrot.slane %v408_v37, 4 }
 0x2d5   : > { %v410_v39 = vadd.f32 %v409_v38, %v408_v37 }
 0x2d6   : > { %v424_v40 = vpop.xlane.xlu0 %423 }
 0x2d7   : > { %v411_v41 = vrot.slane %v410_v39, 2  ;;  %v425_v42 = vrot.slane %v424_v40, 4 }
 0x2d9   : > { %v426_v43 = vadd.f32 %v425_v42, %v424_v40  ;;  %v412_v44 = vadd.f32 %v411_v41, %v410_v39 }
 0x2db   : > { %v427_v45 = vrot.slane %v426_v43, 2  ;;  %v413_v46 = vrot.slane %v412_v44, 1 }
 0x2dd   : > { %v428_v47 = vadd.f32 %v427_v45, %v426_v43  ;;  %v414_v48 = vadd.f32 %v413_v46, %v412_v44 }
 0x2df   : > { %627 = vpush %v414_v48  ;;  %v429_v49 = vrot.slane %v428_v47, 1 }
 0x2e1   : > { %v430_v50 = vadd.f32 %v429_v49, %v428_v47 }
 0x2e3   : > { %629 = vpush %v430_v50 }
 0x310   : > { %s628_s18 = spop %627 }
 0x311   : > { %v432_v51 = vstv %s628_s18 }
 0x312   : > { %433 = vst [vmem:[%s1142_s17] sm:$0xff] %v432_v51 }
 0x314   : > { %s630_s11 = spop %629 }
 0x315   : > { %v434_v52 = vstv %s630_s11 }
 0x316   : > { %435 = vst [vmem:[%s1144_s15] sm:$0xff] %v434_v52 }
 0x317 PF: > { %s622_s21 = sshll.u32 %s926_s19, 7  ;;  %s455_s28 = sshll.u32 %s1142_s17, 4  ;;  %s456_s28 = int_to_ptr.vmem [resolvable:$true] %s455_s28 }
 0x318   : > { %s1194_s27 = scalar_lea.hbm %s1280_s2, %s622_s21  ;;  %s437_s8 = scalar_lea.sflag [#allocation7], %s1133_s20 }
 0x319   : > { %s784_s25 = scalar_lea.vmem %s456_s28, 128  ;;  %s947_s30 = smov [#allocation8]  }
 0x31a   : > { %p785_p4 = scmp.ne.s32.totalorder %s456_s28, %s784_s25  ;;  %s788_s5 = sshll.u32 %s947_s30, 4  ;;  %s789_s5 = int_to_ptr.vmem [resolvable:$false] %s788_s5 }
 0x31b   : > { %s790_s6 = scalar_lea.vmem %s789_s5, 256  ;;  %p791_p8 = scmp.lt.s32.totalorder %s456_s28, %s789_s5 }
 0x31c   : > { %p786_p5 = pnand %p785_p4, %p1051_p12  ;;  %p792_p10 = scmp.lt.s32.totalorder %s790_s6, %s784_s25 }
 0x31e   : > { %p787_p6 = pneg %p786_p5  ;;  %p793_p11 = por %p792_p10, %p791_p8 }
 0x320   : > { %p794_p13 = pnand %p793_p11, %p787_p6 }
 0x322   : > { %797 = shalt.err (!%p794_p13)
}
 0x323   : > { %s798_s23 = scalar_lea.hbm %s1194_s27, 128  ;;  %s802_s4 = scalar_lea.hbm %s1280_s2, 256 }
 0x324   : > { %p799_p9 = scmp.ne.s32.totalorder %s1194_s27, %s798_s23  ;;  %p803_p3 = scmp.lt.u32.totalorder %s1194_s27, %s1280_s2 }
 0x325   : > { %p804_p7 = scmp.lt.u32.totalorder %s802_s4, %s798_s23  ;;  %p806_p4 = scmp.lt.u32.totalorder %s798_s23, %s1194_s27 }
 0x326   : > { %p800_p0 = pnand %p799_p9, %p1051_p12 }
 0x327   : > { %p805_p2 = por %p804_p7, %p803_p3 }
 0x328   : > { %p801_p1 = pneg %p800_p0 }
 0x329   : > { %p807_p5 = por %p806_p4, %p805_p2 }
 0x32b   : > { %p808_p6 = pnand %p807_p5, %p801_p1 }
 0x32d   : > { %811 = shalt.err (!%p808_p6)
}
 0x32e   : > { %632 = dma.vmem_to_hbm [thread:$0]  (%p1051_p12), %s456_s28, 128, %s1194_s27, %s437_s8  }
 0x32f   : > { %s1220_s9 = scalar_lea.hbm %s1281_s3, %s622_s21  ;;  %s468_s25 = sshll.u32 %s1144_s15, 4  ;;  %s469_s25 = int_to_ptr.vmem [resolvable:$true] %s468_s25 }
 0x330   : > { %s442_s30 = scalar_lea.sflag [#allocation10], %s1133_s20  ;;  %s812_s5 = scalar_lea.vmem %s469_s25, 128 }
 0x331   : > { %p813_p8 = scmp.ne.s32.totalorder %s469_s25, %s812_s5  ;;  %s948_s6 = smov [#allocation9]  }
 0x332   : > { %s816_s23 = sshll.u32 %s948_s6, 4  ;;  %s817_s23 = int_to_ptr.vmem [resolvable:$false] %s816_s23 }
 0x333   : > { %p814_p10 = pnand %p813_p8, %p1051_p12  ;;  %s818_s29 = scalar_lea.vmem %s817_s23, 256 }
 0x334   : > { %p819_p13 = scmp.lt.s32.totalorder %s469_s25, %s817_s23  ;;  %p820_p9 = scmp.lt.s32.totalorder %s818_s29, %s812_s5 }
 0x335   : > { %p815_p11 = pneg %p814_p10 }
 0x336   : > { %p821_p0 = por %p820_p9, %p819_p13 }
 0x338   : > { %p822_p1 = pnand %p821_p0, %p815_p11 }
 0x33a   : > { %825 = shalt.err (!%p822_p1)
}
 0x33b   : > { %s826_s19 = scalar_lea.hbm %s1220_s9, 128  ;;  %s830_s21 = scalar_lea.hbm %s1281_s3, 256 }
 0x33c   : > { %p827_p3 = scmp.ne.s32.totalorder %s1220_s9, %s826_s19  ;;  %p831_p4 = scmp.lt.u32.totalorder %s1220_s9, %s1281_s3 }
 0x33d   : > { %p832_p5 = scmp.lt.u32.totalorder %s830_s21, %s826_s19  ;;  %p834_p8 = scmp.lt.u32.totalorder %s826_s19, %s1220_s9 }
 0x33e   : > { %p828_p7 = pnand %p827_p3, %p1051_p12 }
 0x33f   : > { %p833_p6 = por %p832_p5, %p831_p4 }
 0x340   : > { %p829_p2 = pneg %p828_p7 }
 0x341   : > { %p835_p10 = por %p834_p8, %p833_p6 }
 0x343   : > { %p836_p11 = pnand %p835_p10, %p829_p2 }
 0x345   : > { %839 = shalt.err (!%p836_p11)
}
 0x346   : > { %633 = dma.vmem_to_hbm [thread:$0]  (%p1051_p12), %s469_s25, 128, %s1220_s9, %s442_s30  }
 0x347 PF: > { %p643_p13 = scmp.ge.s32.totalorder %s938_s22, 2  ;;  %s480_s8 = sand.u32 1, %s898_s12  }
 0x348   : > { %p1298_p9 = scmp.ne.s32.totalorder %s1297_s10, 0  ;;  %s481_s17 = scalar_lea.sflag [#allocation7], %s480_s8 }
 0x34a   : > { %p637_p0 = pnand %p643_p13, %p1298_p9 }
 0x34c   : > { %889 = dma.done.wait (!%p637_p0), %s481_s17, 128  }
 0x34d   : > { %891 = vsyncadd (!%p637_p0), %s481_s17, 4294967168  ;;  %s490_s4 = scalar_lea.sflag [#allocation10], %s480_s8 }
 0x34e   : > { %893 = dma.done.wait (!%p637_p0), %s490_s4, 128  }
 0x34f   : > { %895 = vsyncadd (!%p637_p0), %s490_s4, 4294967168  ;;  %s23_s22 = sadd.s32 1, %s938_s22   ;;  %s1299_s7 = sld [smem:[#allocation19_spill]] }
 0x350   : > { %p20_p1 = scmp.ge.s32.totalorder %s23_s22, 6   ;;  %s1300_s24 = sld [smem:[#allocation14_spill]] }
 0x351   : > { %s1301_s17 = sld [smem:[#allocation20_spill]]  ;;  %s1302_s18 = sld [smem:[#allocation15_spill]] }
 0x352   : > { %s1303_s19 = sld [smem:[#allocation16_spill]]  ;;  %s1304_s20 = sld [smem:[#allocation17_spill]] }
 0x353   : > { %s1305_s21 = sld [smem:[#allocation18_spill]]  ;;  %s1306_s12 = smov %s902_s13 }
 0x354   : > { %s1307_s13 = smov %s906_s14  ;;  %s1309_s15 = smov %s914_s16 }
 0x355   : > { %s1308_s14 = smov %s1299_s7  ;;  %22 = sbr.rel (!%p20_p1) target bundleno = 11 (0xb), region = 101 }
 0x356   : > { %s1310_s16 = smov %s1300_s24 }
 0x35c   :  { %495 = vsyncpa [#allocation6], 1 }
 0x35d   :  { %497 = vsyncpa [#allocation6 + $0x1], 1 }
 0x35e   :  { %498 = vsyncpa [#allocation7], 1 }
 0x35f   :  { %500 = vsyncpa [#allocation7 + $0x1], 1 }
 0x360   :  { %501 = vsyncpa [#allocation10], 1 }
 0x361   :  { %503 = vsyncpa [#allocation10 + $0x1], 1 }

</bundles_post_ra>
